<compile_context>
chip_gen: v7x
topology: tpu7x:2x2x1
jax: 0.10.0
libtpu: 0.0.40
codegen_flags: <defaults>
</compile_context>

<pallas_src>
import functools

import jax
import jax.numpy as jnp
from jax.experimental import pallas as pl
from jax.experimental.pallas import tpu as pltpu


def _vecsim_kernel(i_tbl, j_tbl, p_ref, s_ref, sums_ref, cnts_ref, diffs_ref,
                   *, n, tm, m, m_pad, d_orig, dp, threshold):
    b = pl.program_id(0)
    t = pl.program_id(1)
    eps = jnp.float32(d_orig * 1e-9)  # torch adds 1e-9 per original coord.

    # ---- per-batch precompute: scaled difference vectors for all N*N pairs --
    @pl.when(t == 0)
    def _precompute():
        p = p_ref[...]  # [n, dp] f32, coords zero-padded beyond d_orig
        if m_pad > m:
            # Zero the padded pair rows: zero rows produce exactly-zero dots,
            # so they add nothing to the sum and are never counted.
            diffs_ref[pl.ds(m, m_pad - m), :] = jnp.zeros(
                (m_pad - m, dp), jnp.float32)

        @pl.loop(0, n)
        def _(a):
            off = a * n
            if n % 8 == 0:
                off = pl.multiple_of(off, 8)
            row = p_ref[pl.ds(a, 1), :]          # [1, dp]  (point a)
            s_col = s_ref[pl.ds(off, n), :]      # [n, 1]   (similarity row a)
            s_col = jnp.where(s_col < threshold, 0.0, s_col)  # fused threshold
            # pairs (a, 0..n-1): p[a] - p[c], scaled by the thresholded sim.
            diffs_ref[pl.ds(off, n), :] = (row - p) * s_col

    # ---- hot loop: one symmetric tile pair (i <= j) per grid step ----------
    i = i_tbl[t]
    j = j_tbl[t]
    off_i = pl.multiple_of(i * tm, 8)
    off_j = pl.multiple_of(j * tm, 8)
    va = diffs_ref[pl.ds(off_i, tm), :]          # [tm, dp]
    vb = diffs_ref[pl.ds(off_j, tm), :]          # [tm, dp]

    # Gram matrix of the two tiles of difference vectors (K = dp on the MXU).
    dots = jax.lax.dot_general(
        va, vb, (((1,), (1,)), ((), ())), preferred_element_type=jnp.float32)

    # idx_num contribution: nonzero dot products, counted before abs().
    cnts_ref[b, t] = jnp.sum((dots != 0.0).astype(jnp.int32))

    # Row-side inverse norms [tm, 1] (exact VPU reduce + EUP rsqrt).
    inv_a = jax.lax.rsqrt(jnp.sum(va * va, axis=1, keepdims=True) + eps)
    # Column-side inverse norms as a lane row [1, tm] via a 1-row matmul (the
    # cross-lane reduction rides the MXU, so no transpose/relayout is needed).
    sumsq_b = jax.lax.dot_general(
        jnp.ones((1, dp), jnp.float32), vb * vb,
        (((1,), (1,)), ((), ())), preferred_element_type=jnp.float32)
    inv_b = jax.lax.rsqrt(sumsq_b + eps)

    # Norms are strictly positive thanks to eps, so torch's "== 0 -> 1" fixup
    # is a no-op; cos = |dots| * inv_norm_i * inv_norm_j.
    sums_ref[b, t] = jnp.sum(jnp.abs(dots) * inv_a * inv_b)


def _pick_pair_tile(m, target=1024):
    """Pair-axis tile size: multiple of 8 (single tile) or 128 (tiled)."""
    target = max(8, int(target))
    if m <= target:
        tm = max(8, ((m + 7) // 8) * 8)
        return tm, 1
    n_tiles = -(-m // target)
    tm = ((-(-m // n_tiles) + 127) // 128) * 128   # lane/MXU friendly
    n_tiles = -(-m // tm)
    return tm, n_tiles


def compute_vec_similarity_loss(gt_points, cos_similarity, threshold, *,
                                target_rows=1024):
    """Forward pass of ComputeVecSimilarityLoss. Returns a float32 scalar."""
    gt_points = jnp.asarray(gt_points, jnp.float32)
    cos_similarity = jnp.asarray(cos_similarity, jnp.float32)
    B, N, D = gt_points.shape
    M = N * N

    # Pad coords to one sublane group of lanes; zeros don't affect dots/norms
    # (the per-coord epsilon is applied in-kernel for the original D coords).
    Dp = max(8, ((D + 7) // 8) * 8)
    p = jnp.pad(gt_points, ((0, 0), (0, 0), (0, Dp - D)))

    # Raw similarity flattened to a per-pair column (free reshape in HBM);
    # thresholding is fused into the kernel's precompute phase.
    s_flat = cos_similarity.reshape(B, M, 1)

    tm, n_tiles = _pick_pair_tile(M, target_rows)
    m_pad = tm * n_tiles

    # Symmetric tile-pair enumeration (i <= j); off-diagonal blocks are
    # weighted 2x in the host-side reduction.
    pairs = [(i, j) for i in range(n_tiles) for j in range(i, n_tiles)]
    P = len(pairs)
    i_tbl = jnp.asarray([ij[0] for ij in pairs], jnp.int32)
    j_tbl = jnp.asarray([ij[1] for ij in pairs], jnp.int32)

    kernel = functools.partial(
        _vecsim_kernel, n=N, tm=tm, m=M, m_pad=m_pad, d_orig=D, dp=Dp,
        threshold=float(threshold))

    sums, cnts = pl.pallas_call(
        kernel,
        out_shape=(
            jax.ShapeDtypeStruct((B, P), jnp.float32),
            jax.ShapeDtypeStruct((B, P), jnp.int32),
        ),
        grid_spec=pltpu.PrefetchScalarGridSpec(
            num_scalar_prefetch=2,
            grid=(B, P),
            in_specs=[
                pl.BlockSpec((pl.Squeezed(), N, Dp),
                             lambda b, t, it, jt: (b, 0, 0)),
                pl.BlockSpec((pl.Squeezed(), M, 1),
                             lambda b, t, it, jt: (b, 0, 0)),
            ],
            out_specs=(
                pl.BlockSpec(memory_space=pltpu.MemorySpace.SMEM),
                pl.BlockSpec(memory_space=pltpu.MemorySpace.SMEM),
            ),
            scratch_shapes=[pltpu.VMEM((m_pad, Dp), jnp.float32)],
        ),
        compiler_params=pltpu.CompilerParams(
            dimension_semantics=("arbitrary", "arbitrary"),
            vmem_limit_bytes=64 * 1024 * 1024,
        ),
    )(i_tbl, j_tbl, p, s_flat)

    # torch: sum(vectors_cos) / idx_num (integer count -> float division).
    w = jnp.where(i_tbl == j_tbl, 1.0, 2.0).astype(jnp.float32)   # [P]
    total_sum = jnp.sum(sums * w[None, :])
    total_cnt = jnp.sum(cnts.astype(jnp.float32) * w[None, :])
    return total_sum / total_cnt


def _reference(p1, similarity_map, threshold):
    """Pure-JAX replica of the torch code for verification."""
    B, N, D = p1.shape
    vectors = p1[:, :, None, :] - p1[:, None, :, :]
    sm = jnp.where(similarity_map < threshold, 0.0, similarity_map)
    vectors = vectors * sm.reshape(B, N, N, 1)
    vectors = vectors.reshape(B, N * N, D)
    vdot = jnp.sum(vectors[:, :, None, :] * vectors[:, None, :, :], axis=3)
    idx_num = jnp.sum(vdot != 0)
    vdot = jnp.abs(vdot)
    vabs = jnp.sqrt(jnp.sum(vectors * vectors + 1e-9, axis=2, keepdims=True))
    vabsdot = jnp.sum(vabs[:, :, None, :] * vabs[:, None, :, :], axis=3)
    vabsdot = jnp.where(vabsdot == 0, 1.0, vabsdot)
    vcos = vdot / vabsdot
    return jnp.sum(vcos) / idx_num


if __name__ == "__main__":
    key = jax.random.PRNGKey(0)
    k1, k2 = jax.random.split(key)

    # Case 1: module-typical small shapes (single pair-tile path).
    B, N, D = 2, 8, 3
    gt_points = jax.random.normal(k1, (B, N, D), dtype=jnp.float32)
    cos_similarity = jax.random.uniform(
        k2, (B, N, N), minval=-1.0, maxval=1.0, dtype=jnp.float32)
    threshold = 0.5

    loss = jax.block_until_ready(
        compute_vec_similarity_loss(gt_points, cos_similarity, threshold))
    ref = jax.block_until_ready(_reference(gt_points, cos_similarity, threshold))
    assert jnp.isfinite(loss), loss
    assert jnp.allclose(loss, ref, rtol=1e-4, atol=1e-5), (loss, ref)

    # Case 2: forces the multi-tile symmetric path (2 pair tiles -> 3 tile
    # pairs, off-diagonal tiles weighted 2x) with tm = 128.
    k3, k4 = jax.random.split(k2)
    B2, N2, D2 = 2, 16, 3
    gt2 = jax.random.normal(k3, (B2, N2, D2), dtype=jnp.float32)
    sim2 = jax.random.uniform(
        k4, (B2, N2, N2), minval=-1.0, maxval=1.0, dtype=jnp.float32)
    loss2 = jax.block_until_ready(
        compute_vec_similarity_loss(gt2, sim2, 0.3, target_rows=100))
    ref2 = jax.block_until_ready(_reference(gt2, sim2, 0.3))
    assert jnp.isfinite(loss2), loss2
    assert jnp.allclose(loss2, ref2, rtol=1e-4, atol=1e-5), (loss2, ref2)

    print("KERNEL_OK")
</pallas_src>

<mosaic_0001>
module attributes {stable_mosaic.version = 11 : i64} {
  func.func @_vecsim_kernel(%arg0: i32, %arg1: i32, %arg2: memref<1xi32, #tpu.memory_space<smem>>, %arg3: memref<1xi32, #tpu.memory_space<smem>>, %arg4: memref<1x8x8xf32, #tpu.memory_space<vmem>>, %arg5: memref<1x64x1xf32, #tpu.memory_space<vmem>>, %arg6: memref<2x1xf32, #tpu.memory_space<smem>>, %arg7: memref<2x1xi32, #tpu.memory_space<smem>>, %arg8: memref<64x8xf32, #tpu.memory_space<vmem>>) attributes {dimension_semantics = [#tpu.dimension_semantics<arbitrary>, #tpu.dimension_semantics<arbitrary>], iteration_bounds = array<i64: 2, 1>, scalar_prefetch = 2 : i64, scratch_operands = 1 : i64, tpu.core_type = #tpu.core_type<tc>, window_params = [{transform_indices = @transform_0, window_bounds = array<i64: 1, 8, 8>}, {transform_indices = @transform_1, window_bounds = array<i64: 1, 64, 1>}, {transform_indices = @transform_2, window_bounds = array<i64: 2, 1>}, {transform_indices = @transform_3, window_bounds = array<i64: 2, 1>}]} {
    %c0_i32 = arith.constant 0 : i32
    %0 = arith.cmpi eq, %arg1, %c0_i32 : i32
    %1 = arith.extui %0 : i1 to i32
    %c0_i32_0 = arith.constant 0 : i32
    %2 = arith.cmpi ne, %1, %c0_i32_0 : i32
    scf.if %2 {
      %c0_11 = arith.constant 0 : index
      %c0_12 = arith.constant 0 : index
      %c0_13 = arith.constant 0 : index
      %50 = vector.load %arg4[%c0_11, %c0_12, %c0_13] : memref<1x8x8xf32, #tpu.memory_space<vmem>>, vector<1x8x8xf32>
      %51 = vector.shape_cast %50 : vector<1x8x8xf32> to vector<8x8xf32>
      %c0_i32_14 = arith.constant 0 : i32
      %c8_i32 = arith.constant 8 : i32
      %52 = arith.addi %c0_i32_14, %c8_i32 : i32
      %c1_i32 = arith.constant 1 : i32
      scf.for %arg9 = %c0_i32_14 to %52 step %c1_i32  : i32 {
        %c1_i32_16 = arith.constant 1 : i32
        %53 = arith.muli %arg9, %c1_i32_16 : i32
        %c0_i32_17 = arith.constant 0 : i32
        %54 = arith.addi %c0_i32_17, %53 : i32
        %c8_i32_18 = arith.constant 8 : i32
        %55 = arith.muli %54, %c8_i32_18 : i32
        %56 = tpu.assume_multiple %55, 8 : i32
        %c0_19 = arith.constant 0 : index
        %57 = arith.index_cast %54 : i32 to index
        %c0_20 = arith.constant 0 : index
        %58 = vector.load %arg4[%c0_19, %57, %c0_20] : memref<1x8x8xf32, #tpu.memory_space<vmem>>, vector<1x1x8xf32>
        %59 = vector.shape_cast %58 : vector<1x1x8xf32> to vector<1x8xf32>
        %c0_21 = arith.constant 0 : index
        %60 = arith.index_cast %56 : i32 to index
        %c0_22 = arith.constant 0 : index
        %61 = vector.load %arg5[%c0_21, %60, %c0_22] : memref<1x64x1xf32, #tpu.memory_space<vmem>>, vector<1x8x1xf32>
        %62 = vector.shape_cast %61 : vector<1x8x1xf32> to vector<8x1xf32>
        %cst_23 = arith.constant 5.000000e-01 : f32
        %63 = vector.broadcast %cst_23 : f32 to vector<8x1xf32>
        %64 = arith.cmpf olt, %62, %63 : vector<8x1xf32>
        %cst_24 = arith.constant 0.000000e+00 : f32
        %65 = vector.broadcast %cst_24 : f32 to vector<8x1xf32>
        %66 = arith.select %64, %65, %62 : vector<8x1xi1>, vector<8x1xf32>
        %67 = vector.broadcast %59 : vector<1x8xf32> to vector<8x8xf32>
        %68 = arith.subf %67, %51 : vector<8x8xf32>
        %69 = vector.broadcast %66 : vector<8x1xf32> to vector<8x8xf32>
        %70 = arith.mulf %68, %69 : vector<8x8xf32>
        %71 = arith.index_cast %56 : i32 to index
        %c0_25 = arith.constant 0 : index
        %72 = vector.load %arg8[%71, %c0_25] : memref<64x8xf32, #tpu.memory_space<vmem>>, vector<8x8xf32>
        tpu.vector_store %arg8[%71, %c0_25], %70 {strides = array<i32>} : memref<64x8xf32, #tpu.memory_space<vmem>>, vector<8x8xf32>,
      }
      %c8_i32_15 = arith.constant 8 : i32
    } else {
    }
    %3 = arith.index_cast %arg1 : i32 to index
    %4 = memref.load %arg2[%3] : memref<1xi32, #tpu.memory_space<smem>>
    %5 = arith.index_cast %arg1 : i32 to index
    %6 = memref.load %arg3[%5] : memref<1xi32, #tpu.memory_space<smem>>
    %c64_i32 = arith.constant 64 : i32
    %7 = arith.muli %4, %c64_i32 : i32
    %8 = tpu.assume_multiple %7, 8 : i32
    %c64_i32_1 = arith.constant 64 : i32
    %9 = arith.muli %6, %c64_i32_1 : i32
    %10 = tpu.assume_multiple %9, 8 : i32
    %11 = arith.index_cast %8 : i32 to index
    %c0 = arith.constant 0 : index
    %12 = vector.load %arg8[%11, %c0] : memref<64x8xf32, #tpu.memory_space<vmem>>, vector<64x8xf32>
    %13 = arith.index_cast %10 : i32 to index
    %c0_2 = arith.constant 0 : index
    %14 = vector.load %arg8[%13, %c0_2] : memref<64x8xf32, #tpu.memory_space<vmem>>, vector<64x8xf32>
    %cst = arith.constant dense<0.000000e+00> : vector<64x64xf32>
    %15 = tpu.matmul %12, %14, %cst {dimension_numbers = #tpu.dot_dimension_numbers<[1], [1], [0], [0], [0, 0, 1, 0], [], []>} : vector<64x8xf32>, vector<64x8xf32>, vector<64x64xf32> -> vector<64x64xf32>
    %cst_3 = arith.constant 0.000000e+00 : f32
    %16 = vector.broadcast %cst_3 : f32 to vector<64x64xf32>
    %17 = arith.cmpf one, %15, %16 : vector<64x64xf32>
    %18 = arith.extui %17 : vector<64x64xi1> to vector<64x64xi32>
    %19 = vector.shape_cast %18 : vector<64x64xi32> to vector<1x64x64xi32>
    %cst_4 = arith.constant dense<0> : vector<1xi32>
    %20 = vector.multi_reduction <add>, %19, %cst_4 [1, 2] : vector<1x64x64xi32> to vector<1xi32>
    %21 = vector.shape_cast %20 : vector<1xi32> to vector<1x1x1xi32>
    %22 = vector.extract %21[0, 0, 0] : i32 from vector<1x1x1xi32>
    %23 = arith.index_cast %arg0 : i32 to index
    %24 = arith.index_cast %arg1 : i32 to index
    %25 = memref.load %arg7[%23, %24] : memref<2x1xi32, #tpu.memory_space<smem>>
    memref.store %22, %arg7[%23, %24] : memref<2x1xi32, #tpu.memory_space<smem>>
    %26 = arith.mulf %12, %12 : vector<64x8xf32>
    %cst_5 = arith.constant dense<0.000000e+00> : vector<64xf32>
    %27 = vector.multi_reduction <add>, %26, %cst_5 [1] : vector<64x8xf32> to vector<64xf32>
    %28 = vector.shape_cast %27 : vector<64xf32> to vector<64x1xf32>
    %cst_6 = arith.constant 3.000000e-09 : f32
    %29 = vector.broadcast %cst_6 : f32 to vector<64x1xf32>
    %30 = arith.addf %28, %29 : vector<64x1xf32>
    %31 = math.rsqrt %30 : vector<64x1xf32>
    %cst_7 = arith.constant 1.000000e+00 : f32
    %32 = vector.broadcast %cst_7 : f32 to vector<1x8xf32>
    %33 = arith.mulf %14, %14 : vector<64x8xf32>
    %cst_8 = arith.constant dense<0.000000e+00> : vector<1x64xf32>
    %34 = tpu.matmul %32, %33, %cst_8 {dimension_numbers = #tpu.dot_dimension_numbers<[1], [1], [0], [0], [0, 0, 1, 0], [], []>} : vector<1x8xf32>, vector<64x8xf32>, vector<1x64xf32> -> vector<1x64xf32>
    %cst_9 = arith.constant 3.000000e-09 : f32
    %35 = vector.broadcast %cst_9 : f32 to vector<1x64xf32>
    %36 = arith.addf %34, %35 : vector<1x64xf32>
    %37 = math.rsqrt %36 : vector<1x64xf32>
    %38 = math.absf %15 : vector<64x64xf32>
    %39 = vector.broadcast %31 : vector<64x1xf32> to vector<64x64xf32>
    %40 = arith.mulf %38, %39 : vector<64x64xf32>
    %41 = vector.broadcast %37 : vector<1x64xf32> to vector<64x64xf32>
    %42 = arith.mulf %40, %41 : vector<64x64xf32>
    %43 = vector.shape_cast %42 : vector<64x64xf32> to vector<1x64x64xf32>
    %cst_10 = arith.constant dense<0.000000e+00> : vector<1xf32>
    %44 = vector.multi_reduction <add>, %43, %cst_10 [1, 2] : vector<1x64x64xf32> to vector<1xf32>
    %45 = vector.shape_cast %44 : vector<1xf32> to vector<1x1x1xf32>
    %46 = vector.extract %45[0, 0, 0] : f32 from vector<1x1x1xf32>
    %47 = arith.index_cast %arg0 : i32 to index
    %48 = arith.index_cast %arg1 : i32 to index
    %49 = memref.load %arg6[%47, %48] : memref<2x1xf32, #tpu.memory_space<smem>>
    memref.store %46, %arg6[%47, %48] : memref<2x1xf32, #tpu.memory_space<smem>>
    return
  }
  func.func @transform_0(%arg0: i32, %arg1: i32, %arg2: memref<1xi32, #tpu.memory_space<smem>>, %arg3: memref<1xi32, #tpu.memory_space<smem>>) -> (i32, i32, i32) {
    %c0_i32 = arith.constant 0 : i32
    %c0_i32_0 = arith.constant 0 : i32
    %c0_i32_1 = arith.constant 0 : i32
    return %arg0, %c0_i32, %c0_i32_0 : i32, i32, i32
  }
  func.func @transform_1(%arg0: i32, %arg1: i32, %arg2: memref<1xi32, #tpu.memory_space<smem>>, %arg3: memref<1xi32, #tpu.memory_space<smem>>) -> (i32, i32, i32) {
    %c0_i32 = arith.constant 0 : i32
    %c0_i32_0 = arith.constant 0 : i32
    %c0_i32_1 = arith.constant 0 : i32
    return %arg0, %c0_i32, %c0_i32_0 : i32, i32, i32
  }
  func.func @transform_2(%arg0: i32, %arg1: i32, %arg2: memref<1xi32, #tpu.memory_space<smem>>, %arg3: memref<1xi32, #tpu.memory_space<smem>>) -> (i32, i32) {
    %c0_i32 = arith.constant 0 : i32
    %c0_i32_0 = arith.constant 0 : i32
    %c0_i32_1 = arith.constant 0 : i32
    return %c0_i32, %c0_i32_0 : i32, i32
  }
  func.func @transform_3(%arg0: i32, %arg1: i32, %arg2: memref<1xi32, #tpu.memory_space<smem>>, %arg3: memref<1xi32, #tpu.memory_space<smem>>) -> (i32, i32) {
    %c0_i32 = arith.constant 0 : i32
    %c0_i32_0 = arith.constant 0 : i32
    %c0_i32_1 = arith.constant 0 : i32
    return %c0_i32, %c0_i32_0 : i32, i32
  }
}

</mosaic_0001>

<bundles_post_ra>
// kernel: tpu_custom_call.1
= control target key start
LH: loop header
LB: loop body
LE: loop exit
PB: predicated region body
PF: predicated region fallthrough
CT: control target
= control target key end

     0   :  { %s1622_s0 = inlined_call_operand.<no memory space> [shape: s32[1], index: 0, kind: input, shape index: {}]   ;;  %s1623_s1 = inlined_call_operand.<no memory space> [shape: s32[1], index: 1, kind: input, shape index: {}]   ;;  %s1624_s2 = inlined_call_operand.hbm [shape: f32[2,8,8], index: 2, kind: input, shape index: {}]   ;;  %s1625_s3 = inlined_call_operand.hbm [shape: f32[2,64,1], index: 3, kind: input, shape index: {}]   ;;  %s1626_s4 = inlined_call_operand.hbm [shape: f32[2,1], index: 4, kind: output, shape index: {0}]   ;;  %s1627_s5 = inlined_call_operand.hbm [shape: s32[2,1], index: 5, kind: output, shape index: {1}]  }
   0x1   :  { %11 = sst [smem:[#allocation4]] %s1622_s0 }
   0x2   :  { %12 = sst [smem:[#allocation5]] %s1623_s1 }
   0x3   :  { %13 = vsyncpa [#allocation7], 0 }
   0x4   :  { %15 = vsyncpa [#allocation7 + $0x1], 0 }
   0x5   :  { %16 = vsyncpa [#allocation10], 0 }
   0x6   :  { %18 = vsyncpa [#allocation10 + $0x1], 0 }
   0x7   :  { %19 = vsyncpa [#allocation8], 0 }
   0x8   :  { %20 = vsyncpa [#allocation13], 0  ;;  %s1312_s22 = smov 0   ;;  %s1314_s23 = smov 0  }
   0x9   :  { %s1316_s24 = smov 0   ;;  %s1318_s25 = smov 0  }
   0xa   :  { %s1320_s26 = smov 0   ;;  %s1322_s0 = smov 0  }
   0xb LB: > { %s835_s1 = sadd.s32 4294967295, %s1258_s0   ;;  %s38_s27 = sadd.s32 1, %s1254_s26  ;;  %s1258_s0 = sphi %s1322_s0, %s26_s0   ;;  %s1254_s26 = sphi %s1320_s26, %s1643_s26   ;;  %s1250_s25 = sphi %s1318_s25, %s1642_s25   ;;  %s1246_s24 = sphi %s1316_s24, %s1641_s24   ;;  %s1242_s23 = sphi %s1314_s23, %s1640_s23   ;;  %s1238_s22 = sphi %s1312_s22, %s1639_s22  }
   0xc   : > { %p40_p0 = scmp.ge.s32.totalorder %s38_s27, 2  ;;  %s45_s28 = sadd.s32 1, %s1246_s24 }
   0xd   : > { %p52_p1 = scmp.ne.s32.totalorder %s1246_s24, %s1242_s23  ;;  %p53_p2 = scmp.eq.s32.totalorder %s1258_s0, 0 }
   0xe   : > { %s1645_s27 = smov (%p40_p0, %s38_s27), 0  ;;  %p58_p4 = scmp.ne.s32.totalorder %s1242_s23, %s1238_s22 }
   0xf   : > { %p1348_p3 = por %p53_p2, %p52_p1  ;;  %s42_s30 = ssub.s32 %s1254_s26, %s1645_s27 }
  0x10   : > { %p59_p5 = scmp.eq.s32.totalorder %s835_s1, 0  ;;  %p43_p6 = scmp.eq.s32.totalorder %s42_s30, 0 }
  0x11   : > { %p1018_p8 = scmp.lt.s32.totalorder %s1258_s0, 2  ;;  %s1366_s8 = sand.u32 1, %s1246_s24  }
  0x12   : > { %p1357_p7 = por %p59_p5, %p58_p4  ;;  %s839_s9 = sshll.u32 %s1254_s26, 7 }
  0x13   : > { %s1363_s7 = scalar_select %p43_p6, %s1246_s24, %s45_s28  }
  0x14   : > { %s1630_s6 = scalar_select %p1357_p7, 1, 0 }
  0x15   : > { %s838_s10 = sshll.u32 %s1366_s8, 3  ;;  %s1373_s13 = scalar_lea.hbm %s1624_s2, %s839_s9 }
  0x16   : > { %s154_s14 = scalar_lea.vmem [#allocation6], %s838_s10  ;;  %p1377_p9 = pnand %p1018_p8, %p1348_p3 }
  0x17   : > { %s161_s15 = sshll.u32 %s154_s14, 4  ;;  %s151_s17 = scalar_lea.sflag [#allocation7], %s1366_s8  ;;  %s1381_s15 = int_to_ptr.vmem [resolvable:$true] %s161_s15 }
  0x18   : > { %s1108_s18 = scalar_lea.hbm %s1373_s13, 128  ;;  %p1110_p13 = pneg %p1377_p9 }
  0x19   : > { %p1109_p12 = scmp.ne.s32.totalorder %s1373_s13, %s1108_s18  ;;  %s1113_s21 = scalar_lea.hbm %s1624_s2, 256 }
  0x1a   : > { %p1114_p2 = scmp.lt.u32.totalorder %s1373_s13, %s1624_s2  ;;  %p1115_p3 = scmp.lt.u32.totalorder %s1113_s21, %s1108_s18 }
  0x1b   : > { %p1111_p0 = pnand %p1110_p13, %p1109_p12  ;;  %p1117_p5 = scmp.lt.u32.totalorder %s1108_s18, %s1373_s13 }
  0x1c   : > { %p1116_p4 = por %p1115_p3, %p1114_p2 }
  0x1d   : > { %p1112_p1 = pneg %p1111_p0 }
  0x1e   : > { %p1118_p6 = por %p1117_p5, %p1116_p4 }
  0x20   : > { %p1119_p8 = pnand %p1118_p6, %p1112_p1 }
  0x22   : > { %1122 = shalt.err (!%p1119_p8)
}
  0x23   : > { %s1123_s29 = scalar_lea.vmem %s1381_s15, 128  ;;  %s1264_s30 = smov [#allocation6]  }
  0x24   : > { %p1124_p12 = scmp.ne.s32.totalorder %s1381_s15, %s1123_s29  ;;  %s1128_s9 = sshll.u32 %s1264_s30, 4  ;;  %s1129_s9 = int_to_ptr.vmem [resolvable:$false] %s1128_s9 }
  0x25   : > { %s1130_s10 = scalar_lea.vmem %s1129_s9, 256  ;;  %p1131_p11 = scmp.lt.s32.totalorder %s1381_s15, %s1129_s9 }
  0x26   : > { %p1126_p0 = pnand %p1124_p12, %p1110_p13  ;;  %p1132_p2 = scmp.lt.s32.totalorder %s1130_s10, %s1123_s29 }
  0x28   : > { %p1127_p10 = pneg %p1126_p0  ;;  %p1133_p3 = por %p1132_p2, %p1131_p11 }
  0x2a   : > { %p1134_p4 = pnand %p1133_p3, %p1127_p10 }
  0x2c   : > { %1137 = shalt.err (!%p1134_p4)
}
  0x2d   : > { %1014 = dma.hbm_to_vmem [thread:$0]  (!%p1377_p9), %s1373_s13, 128, %s1381_s15, %s151_s17  }
  0x2e   : > { %p1632_p1 = scmp.lt.s32.totalorder %s1258_s0, 3  ;;  %p1633_p5 = scmp.ge.s32.totalorder %s1258_s0, 1 }
  0x2f   : > { %s840_s12 = sshll.u32 %s1366_s8, 6  ;;  %s882_s14 = sshll.u32 %s1254_s26, 10 }
  0x30   : > { %p1415_p6 = pnand %p1633_p5, %p1632_p1  ;;  %s1424_s20 = scalar_lea.hbm %s1625_s3, %s882_s14 }
  0x31   : > { %s172_s21 = scalar_lea.vmem [#allocation9], %s840_s12  ;;  %s169_s13 = scalar_lea.sflag [#allocation10], %s1366_s8 }
  0x32   : > { %s179_s22 = sshll.u32 %s172_s21, 4  ;;  %s1138_s15 = scalar_lea.hbm %s1424_s20, 1024  ;;  %s1426_s22 = int_to_ptr.vmem [resolvable:$true] %s179_s22 }
  0x33   : > { %p1139_p10 = scmp.ne.s32.totalorder %s1424_s20, %s1138_s15  ;;  %s1143_s29 = scalar_lea.hbm %s1625_s3, 2048 }
  0x34   : > { %p1144_p12 = scmp.lt.u32.totalorder %s1424_s20, %s1625_s3  ;;  %p1145_p0 = scmp.lt.u32.totalorder %s1143_s29, %s1138_s15 }
  0x35   : > { %p1141_p11 = pnand %p1139_p10, %p1110_p13  ;;  %p1147_p3 = scmp.lt.u32.totalorder %s1138_s15, %s1424_s20 }
  0x36   : > { %p1146_p2 = por %p1145_p0, %p1144_p12 }
  0x37   : > { %p1142_p8 = pneg %p1141_p11 }
  0x38   : > { %p1148_p4 = por %p1147_p3, %p1146_p2 }
  0x3a   : > { %p1149_p1 = pnand %p1148_p4, %p1142_p8 }
  0x3c   : > { %1152 = shalt.err (!%p1149_p1)
}
  0x3d   : > { %s1153_s10 = scalar_lea.vmem %s1426_s22, 1024  ;;  %s1265_s12 = smov [#allocation9]  }
  0x3e   : > { %p1154_p5 = scmp.ne.s32.totalorder %s1426_s22, %s1153_s10  ;;  %s1158_s14 = sshll.u32 %s1265_s12, 4  ;;  %s1159_s14 = int_to_ptr.vmem [resolvable:$false] %s1158_s14 }
  0x3f   : > { %s1160_s18 = scalar_lea.vmem %s1159_s14, 2048  ;;  %p1161_p7 = scmp.lt.s32.totalorder %s1426_s22, %s1159_s14 }
  0x40   : > { %p1156_p10 = pnand %p1154_p5, %p1110_p13  ;;  %p1162_p12 = scmp.lt.s32.totalorder %s1160_s18, %s1153_s10 }
  0x42   : > { %p1157_p11 = pneg %p1156_p10  ;;  %p1163_p0 = por %p1162_p12, %p1161_p7 }
  0x44   : > { %p1164_p2 = pnand %p1163_p0, %p1157_p11 }
  0x46   : > { %1167 = shalt.err (!%p1164_p2)
}
  0x47   : > { %s1266_s19 = smov 128   ;;  %s1267_s21 = smov 8  }
  0x48   : > { %1017 = dma.hbm_to_vmem [thread:$0]  (!%p1377_p9), %s1424_s20, 1024, %s1426_s22, %s169_s13, %s1266_s19, %s1266_s19, %s1267_s21  }
  0x49   : > { %191 = sbr.rel (%p1415_p6) target bundleno = 732 (0x2dc), region = 28  ;;  %s193_s15 = sand.u32 (!%p1415_p6), 1, %s1242_s23  }
  0x4a   : > { %s844_s17 = sshll.u32 (!%p1415_p6), %s193_s15, 3  ;;  %s194_s28 = scalar_lea.sflag (!%p1415_p6), [#allocation7], %s193_s15 }
  0x4b   : > { %s1457_s29 = scalar_lea.vmem (!%p1415_p6), [#allocation6], %s844_s17  ;;  %p1635_p7 = scmp.ne.s32.totalorder (!%p1415_p6), %s1630_s6, 0 }
  0x50   : > { %1221 = dma.done.wait (%p1635_p7), %s194_s28, 128  }
  0x51   : > { %1223 = vsyncadd (%p1635_p7), %s194_s28, 4294967168  ;;  %s845_s30 = sshll.u32 %s193_s15, 6  ;;  %s203_s16 = scalar_lea.sflag [#allocation10], %s193_s15 }
  0x52   : > { %s206_s8 = scalar_lea.vmem [#allocation9], %s845_s30 }
  0x53   : > { %1225 = dma.done.wait (%p1635_p7), %s203_s16, 1024  }
  0x54   : > { %1227 = vsyncadd (%p1635_p7), %s203_s16, 4294966272  ;;  %v233_v0 = vld [vmem:[%s1457_s29] sm:$0xff]  ;;  %s1260_s11 = smov 0  }
  0x55 LB: >> { %v1268_v1 = vmov 0   ;;  %s846_s20 = sshll.u32 %s1262_s11, 3  ;;  %s241_s13 = scalar_lea.vmem %s1457_s29, %s1262_s11 [#allocation6]  ;;  %vm259_vm1 = vcmask 64512   ;;  %s1262_s11 = sphi %s1260_s11, %s239_s11  }
  0x56   : >> { %1089 = vset.pattern.permute.xlu0 %v1268_v1  ;;  %s243_s22 = scalar_lea.vmem %s206_s8, %s846_s20 [#allocation9]  ;;  %v847_v4 = vld [vmem:[%s241_s13] ss:$0 sm:$0xff]  ;;  %s258_s6 = scalar_lea.vmem [#allocation2], %s846_s20 }
  0x57   : >> { %v244_v2 = vld [vmem:[%s243_s22] sm:$0xff]  ;;  %v251_v5 = vsub.f32 %v847_v4, %v233_v0  ;;  %s239_s11 = sadd.s32 1, %s1262_s11  }
  0x58   : >> { %vm245_vm0 = vcmp.lt.f32.partialorder %v244_v2, 0.5  ;;  %p236_p9 = scmp.ge.s32.totalorder %s239_s11, 8  }
  0x59   : >> { %v246_v3 = vsel %vm245_vm0, 0.0, %v244_v2  ;;  %s262_s9 = sld [smem:[#allocation5]] (%p236_p9)  ;;  %v1269_v8 = vmov (%p236_p9), 0.0|0.0   ;;  %vm1270_vm2 = vmmov (%p236_p9), 0   ;;  %v1271_v9 = vmov (%p236_p9), 0.0   ;;  %vm1473_vm3 = vmpackc.low (%p236_p9), %vm259_vm1, %vm259_vm1  ;;  %s866_s21 = sshll.u32 (%p236_p9), %s1250_s25, 7 }
  0x5a   : >> { %254 = vperm.xlu0 %1089, %v246_v3   ;;  %s261_s10 = sld [smem:[#allocation4]] (%p236_p9)  ;;  %979 = vmatprep.subr.bf16.mxu1 (%p236_p9), %v1269_v8  ;;  %v1272_v59 = vmov (%p236_p9), 1.0   ;;  %vm453_vm6 = vcmask (%p236_p9), 523264   ;;  %p1560_p13 = scmp.eq.s32.totalorder (%p236_p9), %s835_s1, 1 }
  0x5b   : > { %952 = vmatprep.mubr.msk.f32.mxu1 (%p236_p9), %vm1270_vm2, %v1271_v9  ;;  %s495_s28 = scalar_lea.smem (%p236_p9), [#allocation12], %s866_s21  ;;  %s703_s30 = scalar_lea.smem (%p236_p9), [#allocation11], %s866_s21 }
  0x5c   : > { %s1168_s11 = scalar_lea.hbm (%p236_p9), %s1626_s4, 32 }
  0x5d   : > { %p1169_p6 = scmp.ne.s32.totalorder (%p236_p9), %s1626_s4, %s1168_s11  ;;  %p1174_p4 = scmp.lt.u32.totalorder (%p236_p9), %s1168_s11, %s1626_s4 }
  0x5f   : > { %s849_s12 = sshll.u32 (%p236_p9), %s262_s9, 6  ;;  %p1170_p8 = pnand (%p236_p9), %p1169_p6, %p1560_p13 }
  0x60   : > { %s848_s14 = sshll.u32 (%p236_p9), %s261_s10, 6  ;;  %s1477_s18 = scalar_lea.vmem (%p236_p9), [#allocation2], %s849_s12 }
  0x61   : > { %s1483_s19 = scalar_lea.vmem (%p236_p9), [#allocation2], %s848_s14  ;;  %p1171_p3 = pneg (%p236_p9), %p1170_p8 }
  0x63   : > { %p1176_p1 = pnand (%p236_p9), %p1174_p4, %p1171_p3 }
  0xd6   : > { %238 = sbr.rel (!%p236_p9) target bundleno = 85 (0x55), region = 104 }
  0xd9   : >> { %v255_v6 = vpop.permute.xlu0 %254 }
  0xda   : >> { %v257_v7 = vmul.f32 %v255_v6, %v251_v5 }
  0xdc   : >> { %260 = vst.msk [vmem:[%s258_s6] sm:$0xff] %vm259_vm1, %v257_v7 }
  0xe3   : > { %v275_v11 = vld [vmem:[%s1477_s18] sm:$0xff]  ;;  %v276_v12 = vld [vmem:[%s1477_s18 + $0x8] sm:$0xff]  ;;  %v277_v13 = vld [vmem:[%s1477_s18 + $0x10] sm:$0xff] }
  0xe4   : > { %v955_v14 = vpack.c.bf16 %v276_v12, %v275_v11  ;;  %v545_v15 = vmul.f32 %v275_v11, %v275_v11  ;;  %v546_v16 = vmul.f32 %v276_v12, %v276_v12  ;;  %v278_v17 = vld [vmem:[%s1477_s18 + $0x18] sm:$0xff]  ;;  %v266_v19 = vld [vmem:[%s1483_s19] sm:$0xff]  ;;  %v547_v21 = vmul.f32 %v277_v13, %v277_v13  ;;  %v267_v22 = vld [vmem:[%s1483_s19 + $0x8] sm:$0xff] }
  0xe5   : > { %v961_v18 = vpack.c.bf16 %v278_v17, %v277_v13  ;;  %924 = vmatprep.mubr.msk.f32.mxu0 %vm259_vm1, %v266_v19  ;;  %v268_v23 = vld [vmem:[%s1483_s19 + $0x10] sm:$0xff]  ;;  %v497_v24 = vmul.f32 %v266_v19, %v266_v19  ;;  %v548_v25 = vmul.f32 %v278_v17, %v278_v17  ;;  %v269_v26 = vld [vmem:[%s1483_s19 + $0x18] sm:$0xff]  ;;  %v498_v28 = vmul.f32 %v267_v22, %v267_v22  ;;  %v279_v29 = vld [vmem:[%s1477_s18 + $0x20] sm:$0xff] }
  0xe6   : > { %957 = vmatprep.subr.msk.bf16.mxu0 %vm1473_vm3, %v955_v14  ;;  %v980_v20 = vpack.c.bf16 %v546_v16, %v545_v15  ;;  %v499_v27 = vmul.f32 %v268_v23, %v268_v23  ;;  %v280_v30 = vld [vmem:[%s1477_s18 + $0x28] sm:$0xff]  ;;  %v500_v32 = vmul.f32 %v269_v26, %v269_v26  ;;  %v270_v33 = vld [vmem:[%s1483_s19 + $0x20] sm:$0xff]  ;;  %v272_v42 = vld [vmem:[%s1483_s19 + $0x30] sm:$0xff]  ;;  %v549_v46 = vmul.f32 %v279_v29, %v279_v29 }
  0xe7   : > { %960 = vmatpush3.bf16.xpose.msk.msra.mxu0 %vm1473_vm3, %v955_v14  ;;  %v505_v31 = vsel %vm259_vm1, %v497_v24, 0.0  ;;  %v271_v35 = vld [vmem:[%s1483_s19 + $0x28] sm:$0xff]  ;;  %v508_v36 = vsel %vm259_vm1, %v498_v28, 0.0  ;;  %v501_v37 = vmul.f32 %v270_v33, %v270_v33  ;;  %v984_v38 = vpack.c.bf16 %v548_v25, %v547_v21  ;;  %v273_v43 = vld [vmem:[%s1483_s19 + $0x38] sm:$0xff]  ;;  %v281_v50 = vld [vmem:[%s1477_s18 + $0x30] sm:$0xff] }
  0xe8   : > { %982 = vmatpush3.bf16.xpose.msk.msra.mxu1 %vm1473_vm3, %v980_v20  ;;  %963 = vmatprep.subr.msk.bf16.mxu0 %vm1473_vm3, %v961_v18  ;;  %v511_v34 = vsel %vm259_vm1, %v499_v27, 0.0  ;;  %v967_v39 = vpack.c.bf16 %v280_v30, %v279_v29  ;;  %v514_v40 = vsel %vm259_vm1, %v500_v32, 0.0  ;;  %v502_v41 = vmul.f32 %v271_v35, %v271_v35  ;;  %v282_v51 = vld [vmem:[%s1477_s18 + $0x38] sm:$0xff] }
  0xe9   : > { %983 = vmatprep.subr.bf16.mxu1 %v1269_v8  ;;  %506 = vadd.xlane.f32.xlu0 %v505_v31  ;;  %v517_v44 = vsel %vm259_vm1, %v501_v37, 0.0  ;;  %v503_v45 = vmul.f32 %v272_v42, %v272_v42  ;;  %v550_v47 = vmul.f32 %v280_v30, %v280_v30  ;;  %v504_v49 = vmul.f32 %v273_v43, %v273_v43 }
  0xea   : > { %512 = vadd.xlane.f32.xlu1 %v511_v34  ;;  %v520_v48 = vsel %vm259_vm1, %v502_v41, 0.0  ;;  %v973_v54 = vpack.c.bf16 %v282_v51, %v281_v50  ;;  %v551_v56 = vmul.f32 %v281_v50, %v281_v50  ;;  %v552_v57 = vmul.f32 %v282_v51, %v282_v51 }
  0xeb   : > { %v523_v52 = vsel %vm259_vm1, %v503_v45, 0.0  ;;  %v988_v53 = vpack.c.bf16 %v550_v47, %v549_v46  ;;  %v526_v55 = vsel %vm259_vm1, %v504_v49, 0.0  ;;  %v667_v11 = vlaneseq }
  0xec   : > { %v992_v58 = vpack.c.bf16 %v552_v57, %v551_v56 }
  0xed   : > { %509 = vadd.xlane.f32.xlu0 %v508_v36  ;;  %v668_v17 = vshrl.u32 %v667_v11, 7 }
  0xee   : > { %515 = vadd.xlane.f32.xlu1 %v514_v40 }
  0xef   : > { %966 = vmatpush3.bf16.xpose.msk.msra.mxu0 %vm1473_vm3, %v961_v18  ;;  %v669_v28 = vsub.s32 0, %v668_v17 }
  0xf0   : > { %986 = vmatpush3.bf16.xpose.msk.msra.mxu1 %vm1473_vm3, %v984_v38  ;;  %969 = vmatprep.subr.msk.bf16.mxu0 %vm1473_vm3, %v967_v39 }
  0xf1   : > { %987 = vmatprep.subr.bf16.mxu1 %v1269_v8  ;;  %518 = vadd.xlane.f32.xlu0 %v517_v44 }
  0xf2   : > { %521 = vadd.xlane.f32.xlu1 %v520_v48 }
  0xf5   : > { %524 = vadd.xlane.f32.xlu0 %v523_v52 }
  0xf6   : > { %527 = vadd.xlane.f32.xlu1 %v526_v55 }
  0xf7   : > { %972 = vmatpush3.bf16.xpose.msk.msra.mxu0 %vm1473_vm3, %v967_v39 }
  0xf8   : > { %990 = vmatpush3.bf16.xpose.msk.msra.mxu1 %vm1473_vm3, %v988_v53  ;;  %975 = vmatprep.subr.msk.bf16.mxu0 %vm1473_vm3, %v973_v54 }
  0xf9   : > { %991 = vmatprep.subr.bf16.mxu1 %v1269_v8 }
  0xff   : > { %978 = vmatpush3.bf16.xpose.msk.msra.mxu0 %vm1473_vm3, %v973_v54 }
 0x100   : > { %994 = vmatpush3.bf16.xpose.msk.msra.mxu1 %vm1473_vm3, %v992_v58 }
 0x106   : > { %925 = vmatmul.mubr.msk.f32.vlgmr.msra.gmra.mrb[0].mxu0 %vm259_vm1, %v267_v22  ;;  %v1273_v22 = vmov 0  }
 0x107   : > { %953 = vmatmul.mubr.msk.f32.vlgmr.msra.gmra.mrb[0].mxu1 %vm259_vm1, %v1272_v59  ;;  %927 = vmatprep.mubr.msk.f32.mxu0 %vm259_vm1, %v268_v23 }
 0x10a   : > { %928 = vmatmul.mubr.msk.f32.gmra.mrb[2].mxu0 %vm259_vm1, %v269_v26 }
 0x10b   : > { %930 = vmatprep.mubr.msk.f32.mxu0 %vm259_vm1, %v270_v33 }
 0x10e   : > { %931 = vmatmul.mubr.msk.f32.gmra.mrb[4].mxu0 %vm259_vm1, %v271_v35 }
 0x10f   : > { %933 = vmatprep.mubr.msk.f32.mxu0 %vm259_vm1, %v272_v42 }
 0x112   : > { %934 = vmatmul.mubr.msk.f32.gmra.mrb[6].mxu0 %vm259_vm1, %v273_v43 }
 0x176   : > { %v507_v61 = vpop.xlane.xlu0 %506 }
 0x177   : > { %v513_v60 = vpop.xlane.xlu1 %512  ;;  %v529_v3 = vadd.f32 3e-09, %v507_v61 }
 0x178   : > { %v531_v5 = vadd.f32 3e-09, %v513_v60 }
 0x17a   : > { %v510_v63 = vpop.xlane.xlu0 %509 }
 0x17b   : > { %v516_v62 = vpop.xlane.xlu1 %515  ;;  %v530_v2 = vadd.f32 3e-09, %v510_v63 }
 0x17c   : > { %v532_v4 = vadd.f32 3e-09, %v516_v62 }
 0x17d   : > { %1090 = vrsqrt.f32 %v530_v2 }
 0x17e   : > { %v519_v1 = vpop.xlane.xlu0 %518  ;;  %1092 = vrsqrt.f32 %v529_v3 }
 0x17f   : > { %v522_v0 = vpop.xlane.xlu1 %521  ;;  %v533_v9 = vadd.f32 3e-09, %v519_v1  ;;  %1094 = vrsqrt.f32 %v532_v4 }
 0x180   : > { %v534_v7 = vadd.f32 3e-09, %v522_v0  ;;  %1096 = vrsqrt.f32 %v531_v5 }
 0x182   : > { %v525_v8 = vpop.xlane.xlu0 %524  ;;  %1098 = vrsqrt.f32 %v534_v7 }
 0x183   : > { %v528_v6 = vpop.xlane.xlu1 %527  ;;  %v535_v12 = vadd.f32 3e-09, %v525_v8  ;;  %1100 = vrsqrt.f32 %v533_v9 }
 0x184   : > { %v536_v10 = vadd.f32 3e-09, %v528_v6 }
 0x186   : > { %1102 = vrsqrt.f32 %v536_v10 }
 0x187   : > { %1104 = vrsqrt.f32 %v535_v12  ;;  %v1091_v21 = vpop.eup %1090 }
 0x188   : > { %v1093_v27 = vpop.eup %1092 }
 0x189   : > { %v1095_v30 = vpop.eup %1094 }
 0x18a   : > { %v1097_v36 = vpop.eup %1096 }
 0x18c   : > { %v1099_v41 = vpop.eup %1098 }
 0x18d   : > { %v1101_v45 = vpop.eup %1100 }
 0x190   : > { %v1103_v50 = vpop.eup %1102 }
 0x191   : > { %v1105_v56 = vpop.eup %1104 }
 0x1d9   : > { %v926_v13 = vpop.f32.mrb[0].mxu0 }
 0x1da   : > { %v646_v14 = vpop.f32.mrb[0].mxu1  ;;  %v398_v15 = vpop.f32.mrb[1].mxu0  ;;  %vm438_vm4 = vcmp.ne.f32.partialorder %v926_v13, 0.0  ;;  %v652_v19 = vand.u32 2147483647, %v926_v13 }
 0x1db   : > { %v647_v16 = vadd.f32 3e-09, %v646_v14  ;;  %vm437_vm5 = vcmp.ne.f32.partialorder %v398_v15, 0.0  ;;  %v954_v18 = vpop.f32.mrb[1].mxu1  ;;  %v446_v23 = vsel %vm438_vm4, 1, %v1273_v22 }
 0x1dc   : > { %v445_v25 = vsel %vm437_vm5, 1, %v1273_v22  ;;  %v651_v26 = vand.u32 2147483647, %v398_v15  ;;  %v455_v31 = vsel %vm453_vm6, %v446_v23, 0  ;;  %v660_v32 = vmul.f32 %v1091_v21, %v652_v19 }
 0x1dd   : > { %1106 = vrsqrt.f32 %v647_v16  ;;  %v929_v20 = vpop.f32.mrb[2].mxu0  ;;  %v454_v37 = vsel %vm453_vm6, %v445_v25, 0 }
 0x1de   : > { %vm440_vm7 = vcmp.ne.f32.partialorder %v929_v20, 0.0  ;;  %v408_v24 = vpop.f32.mrb[3].mxu0  ;;  %v654_v29 = vand.u32 2147483647, %v929_v20  ;;  %v659_v42 = vmul.f32 %v1093_v27, %v651_v26 }
 0x1df   : > { %vm439_vm8 = vcmp.ne.f32.partialorder %v408_v24, 0.0  ;;  %v448_v33 = vsel %vm440_vm7, 1, %v1273_v22  ;;  %v653_v34 = vand.u32 2147483647, %v408_v24 }
 0x1e0   : > { %v447_v38 = vsel %vm439_vm8, 1, %v1273_v22  ;;  %v457_v46 = vsel %vm453_vm6, %v448_v33, 0  ;;  %v662_v47 = vmul.f32 %v1095_v30, %v654_v29 }
 0x1e1   : > { %v932_v35 = vpop.f32.mrb[4].mxu0  ;;  %v456_v51 = vsel %vm453_vm6, %v447_v38, 0  ;;  %v661_v52 = vmul.f32 %v1097_v36, %v653_v34 }
 0x1e2   : > { %vm442_vm9 = vcmp.ne.f32.partialorder %v932_v35, 0.0  ;;  %v656_v39 = vand.u32 2147483647, %v932_v35  ;;  %v418_v40 = vpop.f32.mrb[5].mxu0 }
 0x1e3   : > { %v450_v43 = vsel %vm442_vm9, 1, %v1273_v22  ;;  %vm441_vm10 = vcmp.ne.f32.partialorder %v418_v40, 0.0  ;;  %v655_v44 = vand.u32 2147483647, %v418_v40 }
 0x1e4   : > { %v460_v48 = vsel %vm453_vm6, %v450_v43, 0  ;;  %v449_v49 = vsel %vm441_vm10, 1, %v1273_v22  ;;  %v664_v57 = vmul.f32 %v1099_v41, %v656_v39 }
 0x1e5   : > { %v461_v53 = vadd.s32 %v460_v48, %v455_v31  ;;  %v458_v54 = vsel %vm453_vm6, %v449_v49, 0  ;;  %v935_v55 = vpop.f32.mrb[6].mxu0  ;;  %v663_v62 = vmul.f32 %v1101_v45, %v655_v44 }
 0x1e6   : > { %v459_v58 = vadd.s32 %v458_v54, %v454_v37  ;;  %vm444_vm11 = vcmp.ne.f32.partialorder %v935_v55, 0.0  ;;  %v658_v59 = vand.u32 2147483647, %v935_v55  ;;  %v428_v60 = vpop.f32.mrb[7].mxu0 }
 0x1e7   : > { %v1107_v61 = vpop.eup %1106  ;;  %v452_v63 = vsel %vm444_vm11, 1, %v1273_v22  ;;  %vm443_vm12 = vcmp.ne.f32.partialorder %v428_v60, 0.0  ;;  %v657_v0 = vand.u32 2147483647, %v428_v60 }
 0x1e8   : > { %v670_v1 = vrot.slane %v1107_v61, %v669_v28  ;;  %v464_v2 = vsel %vm453_vm6, %v452_v63, 0  ;;  %v666_v3 = vmul.f32 %v1103_v50, %v658_v59  ;;  %v451_v4 = vsel %vm443_vm12, 1, %v1273_v22 }
 0x1e9   : > { %v465_v5 = vadd.s32 %v464_v2, %v457_v46  ;;  %v462_v6 = vsel %vm453_vm6, %v451_v4, 0  ;;  %v665_v7 = vmul.f32 %v1105_v56, %v657_v0  ;;  %v466_v8 = vadd.s32 %v461_v53, %v459_v58 }
 0x1ea   : > { %v671_v9 = vmul.f32 %v670_v1, %v659_v42  ;;  %v672_v10 = vmul.f32 %v670_v1, %v660_v32  ;;  %v674_v11 = vmul.f32 %v670_v1, %v662_v47  ;;  %v673_v12 = vmul.f32 %v670_v1, %v661_v52 }
 0x1eb   : > { %v676_v13 = vmul.f32 %v670_v1, %v664_v57  ;;  %v675_v14 = vmul.f32 %v670_v1, %v663_v62  ;;  %v463_v15 = vadd.s32 %v462_v6, %v456_v51  ;;  %v677_v16 = vmul.f32 %v670_v1, %v665_v7 }
 0x1ec   : > { %v679_v17 = vsel %vm453_vm6, %v671_v9, 0.0  ;;  %v680_v18 = vsel %vm453_vm6, %v672_v10, 0.0  ;;  %v678_v21 = vmul.f32 %v670_v1, %v666_v3  ;;  %v682_v22 = vsel %vm453_vm6, %v673_v12, 0.0 }
 0x1ed   : > { %v681_v19 = vadd.f32 %v680_v18, %v679_v17  ;;  %v467_v20 = vadd.s32 %v465_v5, %v463_v15  ;;  %v684_v25 = vsel %vm453_vm6, %v674_v11, 0.0  ;;  %v686_v29 = vsel %vm453_vm6, %v675_v14, 0.0 }
 0x1ee   : > { %v688_v33 = vsel %vm453_vm6, %v676_v13, 0.0  ;;  %v690_v35 = vsel %vm453_vm6, %v677_v16, 0.0  ;;  %v692_v37 = vsel %vm453_vm6, %v678_v21, 0.0 }
 0x1ef   : > { %v683_v23 = vadd.f32 %v682_v22, %v681_v19  ;;  %v468_v24 = vadd.s32 %v467_v20, %v466_v8 }
 0x1f1   : > { %v470_v26 = vshrl.u32 %v468_v24, 16  ;;  %v469_v27 = vand.u32 65535, %v468_v24  ;;  %v685_v28 = vadd.f32 %v684_v25, %v683_v23 }
 0x1f3   : > { %v472_v30 = vcvt.s32.f32 %v470_v26  ;;  %v471_v31 = vcvt.s32.f32 %v469_v27  ;;  %v687_v32 = vadd.f32 %v686_v29, %v685_v28 }
 0x1f5   : > { %475 = vadd.xlane.f32.xlu0 %v472_v30  ;;  %473 = vadd.xlane.f32.xlu1 %v471_v31  ;;  %v689_v34 = vadd.f32 %v688_v33, %v687_v32 }
 0x1f7   : > { %v691_v36 = vadd.f32 %v690_v35, %v689_v34 }
 0x1f9   : > { %v693_v38 = vadd.f32 %v692_v37, %v691_v36 }
 0x1fb   : > { %694 = vadd.xlane.f32.xlu0 %v693_v38 }
 0x282   : > { %v476_v39 = vpop.xlane.xlu0 %475  ;;  %v474_v40 = vpop.xlane.xlu1 %473 }
 0x283   : > { %v478_v41 = vcvt.f32.s32 %v476_v39  ;;  %v477_v43 = vcvt.f32.s32 %v474_v40 }
 0x285   : > { %v479_v42 = vshll.u32 %v478_v41, 16 }
 0x287   : > { %v480_v44 = vadd.s32 %v479_v42, %v477_v43 }
 0x288   : > { %v695_v45 = vpop.xlane.xlu0 %694 }
 0x289   : > { %v481_v46 = vrot.slane %v480_v44, 4  ;;  %v696_v47 = vrot.slane %v695_v45, 4 }
 0x28b   : > { %v482_v48 = vadd.s32 %v481_v46, %v480_v44  ;;  %v697_v49 = vadd.f32 %v696_v47, %v695_v45 }
 0x28d   : > { %v698_v50 = vrot.slane %v697_v49, 2  ;;  %v483_v51 = vrot.slane %v482_v48, 2 }
 0x28f   : > { %v699_v52 = vadd.f32 %v698_v50, %v697_v49  ;;  %v484_v53 = vadd.s32 %v483_v51, %v482_v48 }
 0x291   : > { %v485_v54 = vrot.slane %v484_v53, 1  ;;  %v700_v55 = vrot.slane %v699_v52, 1 }
 0x293   : > { %v486_v56 = vadd.s32 %v485_v54, %v484_v53  ;;  %v701_v57 = vadd.f32 %v700_v55, %v699_v52 }
 0x295   : > { %995 = vpush %v486_v56 }
 0x296   : > { %997 = vpush %v701_v57 }
 0x2c6   : > { %s996_s17 = spop %995 }
 0x2c7   : > { %496 = sst [smem:[%s495_s28]] %s996_s17  ;;  %s998_s29 = spop %997 }
 0x2c8   : > { %704 = sst [smem:[%s703_s30]] %s998_s29 }
 0x2c9   : > { %1179 = shalt.err (!%p1176_p1)
}
 0x2ca   : > { %s1274_s13 = smov [#allocation11]   ;;  %s1180_s14 = scalar_lea.hbm %s1627_s5, 32 }
 0x2cb   : > { %1004 = dma.smem_to_hbm (%p1560_p13), %s1274_s13, 32, %s1626_s4, [#allocation8]  }
 0x2cc   : > { %p1181_p5 = scmp.ne.s32.totalorder %s1627_s5, %s1180_s14  ;;  %p1186_p12 = scmp.lt.u32.totalorder %s1180_s14, %s1627_s5 }
 0x2ce   : > { %p1182_p10 = pnand %p1181_p5, %p1560_p13 }
 0x2d0   : > { %p1183_p11 = pneg %p1182_p10 }
 0x2d2   : > { %p1188_p0 = pnand %p1186_p12, %p1183_p11 }
 0x2d4   : > { %1191 = shalt.err (!%p1188_p0)
}
 0x2d5   : > { %s1275_s28 = smov [#allocation12]  }
 0x2d6   : > { %1006 = dma.smem_to_hbm (%p1560_p13), %s1275_s28, 32, %s1627_s5, [#allocation13]  }
 0x2d7   : > { %1229 = dma.done.wait (%p1560_p13), [#allocation8], 32  }
 0x2d8   : > { %1231 = vsyncadd (%p1560_p13), [#allocation8], 4294967264 }
 0x2d9   : > { %1233 = dma.done.wait (%p1560_p13), [#allocation13], 32  }
 0x2da   : > { %1235 = vsyncadd (%p1560_p13), [#allocation13], 4294967264 }
 0x2db   : > { %731 = sfence }
 0x2dc PF: > { %s26_s0 = sadd.s32 1, %s1258_s0   ;;  %s1639_s22 = smov %s1242_s23 }
 0x2dd   : > { %p23_p2 = scmp.ge.s32.totalorder %s26_s0, 4   ;;  %s1640_s23 = smov %s1246_s24 }
 0x2de   : > { %s1641_s24 = smov %s1363_s7  ;;  %s1642_s25 = smov %s1254_s26 }
 0x2df   : > { %s1643_s26 = smov %s1645_s27  ;;  %25 = sbr.rel (!%p23_p2) target bundleno = 11 (0xb), region = 115 }
 0x2e6   :  { %737 = vsyncpa [#allocation7], 1 }
 0x2e7   :  { %739 = vsyncpa [#allocation7 + $0x1], 1 }
 0x2e8   :  { %740 = vsyncpa [#allocation10], 1 }
 0x2e9   :  { %742 = vsyncpa [#allocation10 + $0x1], 1 }
 0x2ea   :  { %743 = vsyncpa [#allocation8], 1 }
 0x2eb   :  { %745 = vsyncpa [#allocation8 + $0x1], 1 }
 0x2ec   :  { %746 = vsyncpa [#allocation13], 1 }

</bundles_post_ra>
